<compile_context>
chip_gen: v6e
topology: v6e:2x2x1
jax: 0.10.0
libtpu: 0.0.40
codegen_flags: <defaults>
</compile_context>

<pallas_src>
import functools

import jax
import jax.numpy as jnp
from jax.experimental import pallas as pl
from jax.experimental.pallas import tpu as pltpu


def _round_up(x, m):
    return ((x + m - 1) // m) * m


def _linear_kernel_acc(x_ref, w_ref, b_ref, o_ref, acc_ref):
    # x_ref: (tm, tk) bf16, w_ref: (tk, tn) bf16, b_ref: (1, tn) f32,
    # o_ref: (tm, tn) out dtype, acc_ref: (tm, tn) f32 scratch.
    k = pl.program_id(2)

    @pl.when(k == 0)
    def _init():
        acc_ref[...] = jnp.zeros_like(acc_ref)

    acc_ref[...] += jnp.dot(
        x_ref[...], w_ref[...], preferred_element_type=jnp.float32
    )

    @pl.when(k == pl.num_programs(2) - 1)
    def _finalize():
        o_ref[...] = (acc_ref[...] + b_ref[...]).astype(o_ref.dtype)


def _linear_kernel_single_k(x_ref, w_ref, b_ref, o_ref):
    # Whole K reduction fits in one tile: no scratch, no pl.when gates.
    acc = jnp.dot(x_ref[...], w_ref[...], preferred_element_type=jnp.float32)
    o_ref[...] = (acc + b_ref[...]).astype(o_ref.dtype)


def linear_pallas(x2d, weight_kn, bias, *, tile_m=256, tile_n=256, tile_k=512):
    """x2d: (M, K); weight_kn: (K, N); bias: (N,). Returns (M, N) in x2d.dtype."""
    M, K = x2d.shape
    K2, N = weight_kn.shape
    assert K == K2

    # Clamp tiles for small problems while keeping (8, 128) alignment.
    tm = min(tile_m, _round_up(M, 8))
    tn = min(tile_n, _round_up(N, 128))   # lane-dense output tile
    tk = min(tile_k, _round_up(K, 128))

    m_pad = _round_up(M, tm)
    n_pad = _round_up(N, tn)
    k_pad = _round_up(K, tk)

    out_dtype = x2d.dtype

    # bf16 operands for the MXU; f32 bias, f32 accumulation in-kernel.
    x_p = x2d
    if (m_pad, k_pad) != (M, K):
        x_p = jnp.pad(x_p, ((0, m_pad - M), (0, k_pad - K)))
    x_p = x_p.astype(jnp.bfloat16)

    w_p = weight_kn
    if (k_pad, n_pad) != (K, N):
        w_p = jnp.pad(w_p, ((0, k_pad - K), (0, n_pad - N)))
    w_p = w_p.astype(jnp.bfloat16)

    b_p = bias.astype(jnp.float32)
    if n_pad != N:
        b_p = jnp.pad(b_p, (0, n_pad - N))
    b_p = b_p.reshape(1, n_pad)

    grid_m = m_pad // tm
    grid_n = n_pad // tn
    grid_k = k_pad // tk

    cost = pl.CostEstimate(
        flops=2 * m_pad * n_pad * k_pad,
        transcendentals=0,
        bytes_accessed=(
            m_pad * k_pad * 2            # X (bf16)
            + k_pad * n_pad * 2          # W (bf16)
            + n_pad * 4                  # bias (f32)
            + m_pad * n_pad * jnp.dtype(out_dtype).itemsize
        ),
    )

    if grid_k == 1:
        # Fast path: no K reduction loop, no accumulator scratch.
        out = pl.pallas_call(
            _linear_kernel_single_k,
            out_shape=jax.ShapeDtypeStruct((m_pad, n_pad), out_dtype),
            grid=(grid_m, grid_n),
            in_specs=[
                pl.BlockSpec((tm, tk), lambda i, j: (i, 0)),
                pl.BlockSpec((tk, tn), lambda i, j: (0, j)),
                pl.BlockSpec((1, tn), lambda i, j: (0, j)),
            ],
            out_specs=pl.BlockSpec((tm, tn), lambda i, j: (i, j)),
            compiler_params=pltpu.CompilerParams(
                dimension_semantics=("parallel", "parallel"),
                vmem_limit_bytes=48 * 1024 * 1024,
            ),
            cost_estimate=cost,
        )(x_p, w_p, b_p)
    else:
        out = pl.pallas_call(
            _linear_kernel_acc,
            out_shape=jax.ShapeDtypeStruct((m_pad, n_pad), out_dtype),
            grid=(grid_m, grid_n, grid_k),
            in_specs=[
                pl.BlockSpec((tm, tk), lambda i, j, k: (i, k)),
                pl.BlockSpec((tk, tn), lambda i, j, k: (k, j)),
                pl.BlockSpec((1, tn), lambda i, j, k: (0, j)),
            ],
            out_specs=pl.BlockSpec((tm, tn), lambda i, j, k: (i, j)),
            scratch_shapes=[pltpu.VMEM((tm, tn), jnp.float32)],
            compiler_params=pltpu.CompilerParams(
                dimension_semantics=("parallel", "parallel", "arbitrary"),
                vmem_limit_bytes=48 * 1024 * 1024,  # safe on v5e/v6e/v7x
            ),
            cost_estimate=cost,
        )(x_p, w_p, b_p)

    # Strip padding.
    if (m_pad, n_pad) != (M, N):
        out = out[:M, :N]
    return out


def time_distributed_forward(input_seq, weight_kn, bias, *, batch_first=True,
                             tile_m=256, tile_n=256, tile_k=512):
    """Equivalent of TimeDistributed(Linear).forward.

    input_seq: rank > 2 array, last dim = F_in (standard case: (B, T, F_in)).
    """
    assert input_seq.ndim > 2
    f_in = input_seq.shape[-1]
    reshaped_input = input_seq.reshape(-1, f_in)                   # (B*T, F_in)
    output = linear_pallas(reshaped_input, weight_kn, bias,
                           tile_m=tile_m, tile_n=tile_n, tile_k=tile_k)
    f_out = output.shape[-1]
    if batch_first:
        return output.reshape(input_seq.shape[0], -1, f_out)
    else:
        # Matches the PyTorch module: output.view(-1, input_seq.size(1), f_out).
        return output.reshape(-1, input_seq.shape[1], f_out)


if __name__ == "__main__":
    # Small deterministic setup: B=2, T=8, F_in=32, F_out=64.
    B, T, F_IN, F_OUT = 2, 8, 32, 64
    key = jax.random.PRNGKey(0)
    kx, kw, kb = jax.random.split(key, 3)

    x = jax.random.normal(kx, (B, T, F_IN), dtype=jnp.float32)
    # torch Linear weight is (F_OUT, F_IN); store transposed (F_IN, F_OUT).
    weight_kn = (jax.random.normal(kw, (F_OUT, F_IN), dtype=jnp.float32) * 0.05).T
    bias = jax.random.normal(kb, (F_OUT,), dtype=jnp.float32) * 0.05

    fwd = jax.jit(functools.partial(time_distributed_forward, batch_first=True))
    out = fwd(x, weight_kn, bias)
    jax.block_until_ready(out)

    # Reference in plain f32 JAX; bf16 MXU inputs => loose-ish tolerance.
    ref = (x.reshape(-1, F_IN) @ weight_kn + bias).reshape(B, -1, F_OUT)
    assert out.shape == (B, T, F_OUT)
    assert jnp.allclose(out, ref, atol=2e-2, rtol=2e-2), float(
        jnp.max(jnp.abs(out - ref))
    )

    # Also exercise the multi-K-step (accumulator) path with a larger hidden.
    B2, T2, F_IN2, F_OUT2 = 2, 8, 1024, 256
    k2 = jax.random.split(key, 6)
    x2 = jax.random.normal(k2[3], (B2, T2, F_IN2), dtype=jnp.float32)
    w2 = (jax.random.normal(k2[4], (F_OUT2, F_IN2), dtype=jnp.float32) * 0.02).T
    b2 = jax.random.normal(k2[5], (F_OUT2,), dtype=jnp.float32) * 0.02
    out2 = jax.jit(functools.partial(
        time_distributed_forward, batch_first=True, tile_k=512))(x2, w2, b2)
    jax.block_until_ready(out2)
    ref2 = (x2.reshape(-1, F_IN2) @ w2 + b2).reshape(B2, -1, F_OUT2)
    assert out2.shape == (B2, T2, F_OUT2)
    assert jnp.allclose(out2, ref2, atol=1e-1, rtol=1e-1), float(
        jnp.max(jnp.abs(out2 - ref2))
    )

    print("KERNEL_OK")
</pallas_src>

<mosaic_0001>
module attributes {stable_mosaic.version = 11 : i64} {
  func.func @_linear_kernel_single_k(%arg0: i32, %arg1: i32, %arg2: memref<16x128xbf16, #tpu.memory_space<vmem>>, %arg3: memref<128x128xbf16, #tpu.memory_space<vmem>>, %arg4: memref<1x128xf32, #tpu.memory_space<vmem>>, %arg5: memref<16x128xf32, #tpu.memory_space<vmem>>) attributes {dimension_semantics = [#tpu.dimension_semantics<parallel>, #tpu.dimension_semantics<parallel>], iteration_bounds = array<i64: 1, 1>, scalar_prefetch = 0 : i64, scratch_operands = 0 : i64, tpu.core_type = #tpu.core_type<tc>, window_params = [{transform_indices = @transform_0, window_bounds = array<i64: 16, 128>}, {transform_indices = @transform_1, window_bounds = array<i64: 128, 128>}, {transform_indices = @transform_2, window_bounds = array<i64: 1, 128>}, {transform_indices = @transform_3, window_bounds = array<i64: 16, 128>}]} {
    %c0 = arith.constant 0 : index
    %c0_0 = arith.constant 0 : index
    %0 = vector.load %arg2[%c0, %c0_0] : memref<16x128xbf16, #tpu.memory_space<vmem>>, vector<16x128xbf16>
    %c0_1 = arith.constant 0 : index
    %c0_2 = arith.constant 0 : index
    %1 = vector.load %arg3[%c0_1, %c0_2] : memref<128x128xbf16, #tpu.memory_space<vmem>>, vector<128x128xbf16>
    %cst = arith.constant dense<0.000000e+00> : vector<16x128xf32>
    %2 = tpu.matmul %0, %1, %cst {dimension_numbers = #tpu.dot_dimension_numbers<[1], [0], [0], [1], [0, 0, 1, 1], [], []>} : vector<16x128xbf16>, vector<128x128xbf16>, vector<16x128xf32> -> vector<16x128xf32>
    %c0_3 = arith.constant 0 : index
    %c0_4 = arith.constant 0 : index
    %3 = vector.load %arg4[%c0_3, %c0_4] : memref<1x128xf32, #tpu.memory_space<vmem>>, vector<1x128xf32>
    %4 = vector.broadcast %3 : vector<1x128xf32> to vector<16x128xf32>
    %5 = arith.addf %2, %4 : vector<16x128xf32>
    %c0_5 = arith.constant 0 : index
    %c0_6 = arith.constant 0 : index
    %6 = vector.load %arg5[%c0_5, %c0_6] : memref<16x128xf32, #tpu.memory_space<vmem>>, vector<16x128xf32>
    tpu.vector_store %arg5[%c0_5, %c0_6], %5 {strides = array<i32>} : memref<16x128xf32, #tpu.memory_space<vmem>>, vector<16x128xf32>,
    return
  }
  func.func @transform_0(%arg0: i32, %arg1: i32) -> (i32, i32) {
    %c0_i32 = arith.constant 0 : i32
    %c0_i32_0 = arith.constant 0 : i32
    return %arg0, %c0_i32 : i32, i32
  }
  func.func @transform_1(%arg0: i32, %arg1: i32) -> (i32, i32) {
    %c0_i32 = arith.constant 0 : i32
    %c0_i32_0 = arith.constant 0 : i32
    return %c0_i32, %arg1 : i32, i32
  }
  func.func @transform_2(%arg0: i32, %arg1: i32) -> (i32, i32) {
    %c0_i32 = arith.constant 0 : i32
    %c0_i32_0 = arith.constant 0 : i32
    return %c0_i32, %arg1 : i32, i32
  }
  func.func @transform_3(%arg0: i32, %arg1: i32) -> (i32, i32) {
    %c0_i32 = arith.constant 0 : i32
    return %arg0, %arg1 : i32, i32
  }
}

</mosaic_0001>

<bundles_post_ra>
// kernel: time_distributed_forward.1
= control target key start
LH: loop header
LB: loop body
LE: loop exit
PB: predicated region body
PF: predicated region fallthrough
CT: control target
= control target key end

     0   :  { %v191_v0 = vmov 0.0   ;;  %vm192_vm0 = vmmov 0   ;;  %s249_s1 = inlined_call_operand.vmem [shape: bf16[128,128], index: 1, kind: input, shape index: {}]   ;;  %s250_s0 = inlined_call_operand.vmem [shape: bf16[16,128], index: 0, kind: input, shape index: {}]   ;;  %s251_s2 = inlined_call_operand.vmem [shape: f32[1,128], index: 2, kind: input, shape index: {}]   ;;  %s252_s3 = inlined_call_operand.vmem [shape: f32[16,128], index: 3, kind: output, shape index: {}]  }
   0x1   :  { %160 = vmatprep.subr.bf16.mxu0 %v191_v0  ;;  %v182_v1 = vld [vmem:[%s249_s1 + $0x38] sm:$0xff]   ;;  %176 = vmatprep.mubr.msk.bf16.mxu0 %vm192_vm0, %v191_v0  ;;  %v183_v2 = vld [vmem:[%s249_s1 + $0x30] sm:$0xff]   ;;  %v184_v3 = vld [vmem:[%s249_s1 + $0x28] sm:$0xff]  }
   0x2   :  { %161 = vmatpush3.bf16.msra.mxu0 %v182_v1  ;;  %v185_v4 = vld [vmem:[%s249_s1 + $0x20] sm:$0xff]   ;;  %v186_v5 = vld [vmem:[%s249_s1 + $0x18] sm:$0xff]   ;;  %v187_v6 = vld [vmem:[%s249_s1 + $0x10] sm:$0xff]  }
   0x3   :  { %162 = vmatprep.subr.bf16.mxu0 %v191_v0  ;;  %v188_v7 = vld [vmem:[%s249_s1 + $0x8] sm:$0xff]   ;;  %v189_v8 = vld [vmem:[%s249_s1] sm:$0xff]  }
   0x4   :  { %v190_v9 = vld [vmem:[%s250_s0] sm:$0xff]  }
   0x5   :  { %v141_v10 = vld [vmem:[%s251_s2] ss:$0 sm:$0xff] }
   0x6   :  { %163 = vmatpush3.bf16.msra.mxu0 %v183_v2 }
   0x7   :  { %164 = vmatprep.subr.bf16.mxu0 %v191_v0 }
   0xa   :  { %165 = vmatpush3.bf16.msra.mxu0 %v184_v3 }
   0xb   :  { %166 = vmatprep.subr.bf16.mxu0 %v191_v0 }
   0xe   :  { %167 = vmatpush3.bf16.msra.mxu0 %v185_v4 }
   0xf   :  { %168 = vmatprep.subr.bf16.mxu0 %v191_v0 }
  0x12   :  { %169 = vmatpush3.bf16.msra.mxu0 %v186_v5 }
  0x13   :  { %170 = vmatprep.subr.bf16.mxu0 %v191_v0 }
  0x16   :  { %171 = vmatpush3.bf16.msra.mxu0 %v187_v6 }
  0x17   :  { %172 = vmatprep.subr.bf16.mxu0 %v191_v0 }
  0x1a   :  { %173 = vmatpush3.bf16.msra.mxu0 %v188_v7 }
  0x1b   :  { %174 = vmatprep.subr.bf16.mxu0 %v191_v0 }
  0x1e   :  { %175 = vmatpush3.bf16.msra.mxu0 %v189_v8 }
  0x21   :  { %177 = vmatmul.mubr.bf16.vlgmr.msra.gmra.mxu0 %v190_v9 }
  0xe1   :  { %v128_v11 = vpop.f32.mrf.mxu0 }
  0xe2   :  { %v129_v12 = vadd.f32 %v141_v10, %v128_v11 }
  0xe3   :  { %v178_v13 = vpop.f32.mrf.mxu0 }
  0xe4   :  { %135 = vst [vmem:[%s252_s3] sm:$0xff] %v129_v12 }
  0xe5   :  { %v131_v14 = vpop.f32.mrf.mxu0 }
  0xe6   :  { %v132_v15 = vadd.f32 %v141_v10, %v131_v14 }
  0xe7   :  { %v179_v16 = vpop.f32.mrf.mxu0 }
  0xe8   :  { %136 = vst [vmem:[%s252_s3 + $0x8] sm:$0xff] %v132_v15 }

</bundles_post_ra>
